<compile_context>
chip_gen: v7x
topology: tpu7x:2x2x1
jax: 0.10.0
libtpu: 0.0.40
codegen_flags: <defaults>
</compile_context>

<pallas_src>
import jax
import jax.numpy as jnp
import numpy as np
from jax.experimental import pallas as pl
from jax.experimental.pallas import tpu as pltpu

_SUBLANE = 8               # f32 sublane pack; batch tiles are multiples of this
_MiB = 1024 * 1024


def _vmem_capacity_bytes():
    # Generation-aware VMEM ceiling (v5e/v6e: 128 MiB, v7x: 64 MiB per TC).
    try:
        cap = int(getattr(pltpu.get_tpu_info(), "vmem_capacity_bytes", 0))
        if cap > 0:
            return cap
    except Exception:
        pass
    return 64 * _MiB       # conservative fallback = smallest current generation


_VMEM_CAP = _vmem_capacity_bytes()
_VMEM_BUDGET = int(_VMEM_CAP * 0.70)
_VMEM_LIMIT = min(_VMEM_CAP, _VMEM_BUDGET + 8 * _MiB)


def _hyperblock_mlp_kernel(x_ref, w1_ref, b1_ref, w2_ref, b2_ref, o_ref):
    # Fused hot path on one batch tile. Matmuls hit the MXU in the weights'
    # dtype (bf16 by default) with f32 accumulation; bias-add / ReLU stay in f32
    # on the VPU (cheap on every generation, incl. v5e without bf16 VPU ops).
    x = x_ref[...].astype(w1_ref.dtype)          # in-kernel cast, hides under MXU
    h = jnp.dot(x, w1_ref[...], preferred_element_type=jnp.float32) + b1_ref[...]
    h = jnp.maximum(h, 0.0)
    h = h.astype(w2_ref.dtype)
    y = jnp.dot(h, w2_ref[...], preferred_element_type=jnp.float32) + b2_ref[...]
    o_ref[...] = jnp.maximum(y, 0.0).astype(o_ref.dtype)


def _pick_batch_tile(batch, d_in, h1, h2, w_itemsize, out_itemsize):
    """Pick (rows-per-tile, grid) under an explicit VMEM budget."""
    per_row = (2 * d_in * 4                 # x tile (f32), double-buffered
               + 2 * h2 * out_itemsize      # out tile, double-buffered
               + d_in * 2 + h1 * 2          # in-kernel bf16 casts of x and h
               + h1 * 4 + h2 * 4)           # f32 intermediate + accumulator
    fixed = (2 * (d_in * h1 + h1 * h2) * w_itemsize   # W1, W2 (double-buffered)
             + 4 * (h1 + h2) * 4                      # biases
             + 2 * _MiB)                              # Mosaic internal scratch slack
    avail = _VMEM_BUDGET - fixed
    # TODO(synk): if the weights alone exceed the VMEM budget (very large hidden
    # sizes), a second 'arbitrary' grid axis tiling h2 / streaming W2 is needed.
    bm_cap = max(_SUBLANE, (max(avail, 0) // per_row) // _SUBLANE * _SUBLANE)
    if batch <= bm_cap and batch <= 1024:
        # Single tile: no batch split (saves per-step overhead on 1-TC v5e/v6e),
        # no padding, no masked boundary block.
        return batch, 1
    # Large batch: >= 2 grid steps so v7x's two TensorCores split the
    # "parallel" axis; 512-row tiles sit near the HBM roofline.
    bm = min(bm_cap, 512)
    return bm, pl.cdiv(batch, bm)


def _hyperblock_forward(x, w1, b1, w2, b2, *, out_dtype):
    """x: (batch, d_in) float32. w1:(d_in,h1), w2:(h1,h2) in matmul dtype;
    b1:(1,h1), b2:(1,h2) float32. Returns (batch, h2) in out_dtype."""
    batch, d_in = x.shape
    h1 = w1.shape[1]
    h2 = w2.shape[1]
    w_itemsize = w1.dtype.itemsize
    out_itemsize = np.dtype(out_dtype).itemsize
    bm, grid = _pick_batch_tile(batch, d_in, h1, h2, w_itemsize, out_itemsize)

    cost = pl.CostEstimate(
        flops=2 * batch * (d_in * h1 + h1 * h2),
        transcendentals=0,
        bytes_accessed=(batch * d_in * 4
                        + (d_in * h1 + h1 * h2) * w_itemsize
                        + (h1 + h2) * 4
                        + batch * h2 * out_itemsize))

    return pl.pallas_call(
        _hyperblock_mlp_kernel,
        out_shape=jax.ShapeDtypeStruct((batch, h2), out_dtype),
        grid_spec=pltpu.PrefetchScalarGridSpec(
            num_scalar_prefetch=0,
            grid=(grid,),                                    # tile over batch only
            in_specs=[
                pl.BlockSpec((bm, d_in), lambda i: (i, 0)),  # x tile (raw f32)
                pl.BlockSpec((d_in, h1), lambda i: (0, 0)),  # W1 (resident)
                pl.BlockSpec((1, h1), lambda i: (0, 0)),     # b1 (f32)
                pl.BlockSpec((h1, h2), lambda i: (0, 0)),    # W2 (resident)
                pl.BlockSpec((1, h2), lambda i: (0, 0)),     # b2 (f32)
            ],
            out_specs=pl.BlockSpec((bm, h2), lambda i: (i, 0)),  # exact output, no slice
        ),
        compiler_params=pltpu.CompilerParams(
            dimension_semantics=("parallel",),
            vmem_limit_bytes=_VMEM_LIMIT),
        cost_estimate=cost,
    )(x, w1, b1, w2, b2)


_hyperblock_forward_jit = jax.jit(_hyperblock_forward, static_argnames=("out_dtype",))


class HyperBlockPallas:
    """JAX/Pallas port of hyperBlock (blockType=['M','M'], activationMLP=ReLU)."""
    # TODO(synk): 'K' (KAN) blocks are not translated — kan_block's definition is
    # not included in the provided module source; only 'M' (Linear+activation)
    # blocks are implemented (normalize=None, default torch init).

    def __init__(self, input_shape, hidden_sizes, key,
                 matmul_dtype=jnp.bfloat16, out_dtype=jnp.float32):
        assert len(hidden_sizes) == 2
        self.input_dim = int(input_shape[0])
        self.hidden_sizes = tuple(int(h) for h in hidden_sizes)
        self.output_shapes = {"state": (self.hidden_sizes[-1],)}
        self.matmul_dtype = matmul_dtype
        self.out_dtype = np.dtype(out_dtype)

        d_in, h1, h2 = self.input_dim, self.hidden_sizes[0], self.hidden_sizes[1]
        k1, k2, k3, k4 = jax.random.split(key, 4)
        # Deterministic init mimicking torch.nn.Linear's uniform(-1/sqrt(fan_in), ...)
        bound1 = 1.0 / np.sqrt(d_in)
        bound2 = 1.0 / np.sqrt(h1)
        w1 = jax.random.uniform(k1, (d_in, h1), jnp.float32, -bound1, bound1)
        b1 = jax.random.uniform(k2, (1, h1), jnp.float32, -bound1, bound1)
        w2 = jax.random.uniform(k3, (h1, h2), jnp.float32, -bound2, bound2)
        b2 = jax.random.uniform(k4, (1, h2), jnp.float32, -bound2, bound2)
        self.params_f32 = (w1, b1, w2, b2)   # unpadded f32 copy (reference math)

        # Weights kept at their natural (unpadded) shapes — full-dim BlockSpec
        # dims are legal on TPU — and stored in the matmul dtype (bf16 default:
        # MXU fast path + half the DMA bytes). Biases stay f32 (bias-add / ReLU
        # run in f32).
        self.w1 = w1.astype(matmul_dtype)
        self.b1 = b1
        self.w2 = w2.astype(matmul_dtype)
        self.b2 = b2

    def forward(self, observations):
        x = jnp.asarray(observations, dtype=jnp.float32)  # torch.as_tensor(..., float32)
        assert x.ndim == 2 and x.shape[1] == self.input_dim
        out = _hyperblock_forward_jit(x, self.w1, self.b1, self.w2, self.b2,
                                      out_dtype=self.out_dtype)
        return {"state": out}


def _reference_forward(params_f32, x):
    w1, b1, w2, b2 = params_f32
    h = jnp.maximum(jnp.asarray(x, jnp.float32) @ w1 + b1, 0.0)
    return jnp.maximum(h @ w2 + b2, 0.0)


if __name__ == "__main__":
    key = jax.random.PRNGKey(0)
    k_param, k_obs = jax.random.split(key)

    batch, input_dim = 16, 16
    hidden_sizes = (32, 32)
    obs = jax.random.normal(k_obs, (batch, input_dim), dtype=jnp.float32)

    # Default path: bf16 weights/activations on the MXU, f32 accumulation.
    model = HyperBlockPallas((input_dim,), hidden_sizes, k_param)
    out = model.forward(obs)
    state = jax.block_until_ready(out["state"])
    assert state.shape == (batch, hidden_sizes[-1])
    ref = _reference_forward(model.params_f32, obs)
    np.testing.assert_allclose(np.asarray(state), np.asarray(ref),
                               rtol=5e-2, atol=5e-2)

    # f32 matmul path: checks the fused kernel against the reference tightly.
    model_f32 = HyperBlockPallas((input_dim,), hidden_sizes, k_param,
                                 matmul_dtype=jnp.float32)
    state_f32 = jax.block_until_ready(model_f32.forward(obs)["state"])
    assert state_f32.shape == (batch, hidden_sizes[-1])
    np.testing.assert_allclose(np.asarray(state_f32), np.asarray(ref),
                               rtol=1e-5, atol=1e-5)

    print("KERNEL_OK")
</pallas_src>

<mosaic_0001>
module attributes {stable_mosaic.version = 11 : i64} {
  func.func @_hyperblock_mlp_kernel(%arg0: i32, %arg1: memref<16x16xf32, #tpu.memory_space<vmem>>, %arg2: memref<16x32xbf16, #tpu.memory_space<vmem>>, %arg3: memref<1x32xf32, #tpu.memory_space<vmem>>, %arg4: memref<32x32xbf16, #tpu.memory_space<vmem>>, %arg5: memref<1x32xf32, #tpu.memory_space<vmem>>, %arg6: memref<16x32xf32, #tpu.memory_space<vmem>>) attributes {dimension_semantics = [#tpu.dimension_semantics<parallel>], iteration_bounds = array<i64: 1>, scalar_prefetch = 0 : i64, scratch_operands = 0 : i64, tpu.core_type = #tpu.core_type<tc>, window_params = [{transform_indices = @transform_0, window_bounds = array<i64: 16, 16>}, {pipeline_mode = #tpu.pipeline_mode<synchronous>, transform_indices = @transform_1, window_bounds = array<i64: 16, 32>}, {pipeline_mode = #tpu.pipeline_mode<synchronous>, transform_indices = @transform_2, window_bounds = array<i64: 1, 32>}, {pipeline_mode = #tpu.pipeline_mode<synchronous>, transform_indices = @transform_3, window_bounds = array<i64: 32, 32>}, {pipeline_mode = #tpu.pipeline_mode<synchronous>, transform_indices = @transform_4, window_bounds = array<i64: 1, 32>}, {transform_indices = @transform_5, window_bounds = array<i64: 16, 32>}]} {
    %c0 = arith.constant 0 : index
    %c0_0 = arith.constant 0 : index
    %0 = vector.load %arg1[%c0, %c0_0] : memref<16x16xf32, #tpu.memory_space<vmem>>, vector<16x16xf32>
    %1 = arith.truncf %0 : vector<16x16xf32> to vector<16x16xbf16>
    %c0_1 = arith.constant 0 : index
    %c0_2 = arith.constant 0 : index
    %2 = vector.load %arg2[%c0_1, %c0_2] : memref<16x32xbf16, #tpu.memory_space<vmem>>, vector<16x32xbf16>
    %cst = arith.constant dense<0.000000e+00> : vector<16x32xf32>
    %3 = tpu.matmul %1, %2, %cst {dimension_numbers = #tpu.dot_dimension_numbers<[1], [0], [0], [1], [0, 0, 1, 1], [], []>} : vector<16x16xbf16>, vector<16x32xbf16>, vector<16x32xf32> -> vector<16x32xf32>
    %c0_3 = arith.constant 0 : index
    %c0_4 = arith.constant 0 : index
    %4 = vector.load %arg3[%c0_3, %c0_4] : memref<1x32xf32, #tpu.memory_space<vmem>>, vector<1x32xf32>
    %5 = vector.broadcast %4 : vector<1x32xf32> to vector<16x32xf32>
    %6 = arith.addf %3, %5 : vector<16x32xf32>
    %cst_5 = arith.constant 0.000000e+00 : f32
    %7 = vector.broadcast %cst_5 : f32 to vector<16x32xf32>
    %8 = arith.maximumf %6, %7 : vector<16x32xf32>
    %9 = arith.truncf %8 : vector<16x32xf32> to vector<16x32xbf16>
    %c0_6 = arith.constant 0 : index
    %c0_7 = arith.constant 0 : index
    %10 = vector.load %arg4[%c0_6, %c0_7] : memref<32x32xbf16, #tpu.memory_space<vmem>>, vector<32x32xbf16>
    %cst_8 = arith.constant dense<0.000000e+00> : vector<16x32xf32>
    %11 = tpu.matmul %9, %10, %cst_8 {dimension_numbers = #tpu.dot_dimension_numbers<[1], [0], [0], [1], [0, 0, 1, 1], [], []>} : vector<16x32xbf16>, vector<32x32xbf16>, vector<16x32xf32> -> vector<16x32xf32>
    %c0_9 = arith.constant 0 : index
    %c0_10 = arith.constant 0 : index
    %12 = vector.load %arg5[%c0_9, %c0_10] : memref<1x32xf32, #tpu.memory_space<vmem>>, vector<1x32xf32>
    %13 = vector.broadcast %12 : vector<1x32xf32> to vector<16x32xf32>
    %14 = arith.addf %11, %13 : vector<16x32xf32>
    %cst_11 = arith.constant 0.000000e+00 : f32
    %15 = vector.broadcast %cst_11 : f32 to vector<16x32xf32>
    %16 = arith.maximumf %14, %15 : vector<16x32xf32>
    %c0_12 = arith.constant 0 : index
    %c0_13 = arith.constant 0 : index
    %17 = vector.load %arg6[%c0_12, %c0_13] : memref<16x32xf32, #tpu.memory_space<vmem>>, vector<16x32xf32>
    tpu.vector_store %arg6[%c0_12, %c0_13], %16 {strides = array<i32>} : memref<16x32xf32, #tpu.memory_space<vmem>>, vector<16x32xf32>,
    return
  }
  func.func @transform_0(%arg0: i32) -> (i32, i32) {
    %c0_i32 = arith.constant 0 : i32
    %c0_i32_0 = arith.constant 0 : i32
    return %arg0, %c0_i32 : i32, i32
  }
  func.func @transform_1(%arg0: i32) -> (i32, i32) {
    %c0_i32 = arith.constant 0 : i32
    %c0_i32_0 = arith.constant 0 : i32
    %c0_i32_1 = arith.constant 0 : i32
    return %c0_i32, %c0_i32_0 : i32, i32
  }
  func.func @transform_2(%arg0: i32) -> (i32, i32) {
    %c0_i32 = arith.constant 0 : i32
    %c0_i32_0 = arith.constant 0 : i32
    %c0_i32_1 = arith.constant 0 : i32
    return %c0_i32, %c0_i32_0 : i32, i32
  }
  func.func @transform_3(%arg0: i32) -> (i32, i32) {
    %c0_i32 = arith.constant 0 : i32
    %c0_i32_0 = arith.constant 0 : i32
    %c0_i32_1 = arith.constant 0 : i32
    return %c0_i32, %c0_i32_0 : i32, i32
  }
  func.func @transform_4(%arg0: i32) -> (i32, i32) {
    %c0_i32 = arith.constant 0 : i32
    %c0_i32_0 = arith.constant 0 : i32
    %c0_i32_1 = arith.constant 0 : i32
    return %c0_i32, %c0_i32_0 : i32, i32
  }
  func.func @transform_5(%arg0: i32) -> (i32, i32) {
    %c0_i32 = arith.constant 0 : i32
    %c0_i32_0 = arith.constant 0 : i32
    return %arg0, %c0_i32 : i32, i32
  }
}

</mosaic_0001>

<bundles_post_ra>
// kernel: _hyperblock_forward.1
= control target key start
LH: loop header
LB: loop body
LE: loop exit
PB: predicated region body
PF: predicated region fallthrough
CT: control target
= control target key end

     0   :  { %10 = vsyncpa [#allocation3], 0  ;;  %s461_s0 = inlined_call_operand.hbm [shape: f32[16,16], index: 0, kind: input, shape index: {}]   ;;  %s462_s1 = inlined_call_operand.hbm [shape: bf16[16,32], index: 1, kind: input, shape index: {}]   ;;  %s463_s2 = inlined_call_operand.vmem [shape: f32[1,32], index: 2, kind: input, shape index: {}]   ;;  %s464_s3 = inlined_call_operand.hbm [shape: bf16[32,32], index: 3, kind: input, shape index: {}]   ;;  %s465_s4 = inlined_call_operand.vmem [shape: f32[1,32], index: 4, kind: input, shape index: {}]   ;;  %s466_s5 = inlined_call_operand.hbm [shape: f32[16,32], index: 5, kind: output, shape index: {}]  }
   0x1   :  { %11 = vsyncpa [#allocation6], 0 }
   0x2   :  { %12 = vsyncpa [#allocation4], 0  ;;  %s352_s18 = smov [#allocation5]   ;;  %s258_s22 = scalar_lea.hbm %s462_s1, 128 }
   0x3   :  { %s30_s19 = sshll.u32 %s352_s18, 4  ;;  %p259_p0 = scmp.ne.s32.totalorder %s462_s1, %s258_s22  ;;  %s31_s19 = int_to_ptr.vmem [resolvable:$true] %s30_s19 }
   0x4   :  { %p262_p1 = scmp.lt.u32.totalorder %s258_s22, %s462_s1 }
   0x6   :  { %p264_p2 = pnand %p262_p1, %p259_p0 }
   0x8   :  { %267 = shalt.err (!%p264_p2)
}
   0x9   :  { %s268_s27 = scalar_lea.vmem %s31_s19, 128  ;;  %p273_p4 = scmp.lt.s32.totalorder %s31_s19, %s31_s19 }
   0xa   :  { %p269_p3 = scmp.ne.s32.totalorder %s31_s19, %s268_s27  ;;  %p274_p5 = scmp.lt.s32.totalorder %s268_s27, %s268_s27 }
   0xc   :  { %p275_p6 = por %p274_p5, %p273_p4 }
   0xe   :  { %p276_p7 = pnand %p275_p6, %p269_p3 }
  0x10   :  { %279 = shalt.err (!%p276_p7)
}
  0x11   :  { %s353_s28 = smov 64   ;;  %s354_s29 = smov 4  }
  0x12   :  { %36 = dma.hbm_to_vmem [thread:$0]  %s462_s1, 128, %s31_s19, [#allocation6], %s353_s28, %s353_s28, %s354_s29  }
  0x13   :  { %s355_s7 = smov [#allocation2]   ;;  %s280_s11 = scalar_lea.hbm %s461_s0, 256 }
  0x14   :  { %s18_s8 = sshll.u32 %s355_s7, 4  ;;  %p281_p8 = scmp.ne.s32.totalorder %s461_s0, %s280_s11  ;;  %s19_s8 = int_to_ptr.vmem [resolvable:$true] %s18_s8 }
  0x15   :  { %p284_p9 = scmp.lt.u32.totalorder %s280_s11, %s461_s0 }
  0x17   :  { %p286_p10 = pnand %p284_p9, %p281_p8 }
  0x19   :  { %289 = shalt.err (!%p286_p10)
}
  0x1a   :  { %s290_s16 = scalar_lea.vmem %s19_s8, 256  ;;  %p295_p12 = scmp.lt.s32.totalorder %s19_s8, %s19_s8 }
  0x1b   :  { %p291_p11 = scmp.ne.s32.totalorder %s19_s8, %s290_s16  ;;  %p296_p13 = scmp.lt.s32.totalorder %s290_s16, %s290_s16 }
  0x1d   :  { %p297_p0 = por %p296_p13, %p295_p12 }
  0x1f   :  { %p298_p1 = pnand %p297_p0, %p291_p11 }
  0x21   :  { %301 = shalt.err (!%p298_p1)
}
  0x22   :  { %s356_s1 = smov 128   ;;  %s357_s17 = smov 8  }
  0x23   :  { %24 = dma.hbm_to_vmem [thread:$0]  %s461_s0, 256, %s19_s8, [#allocation3], %s356_s1, %s356_s1, %s357_s17  }
  0x24   :  { %s358_s20 = smov [#allocation7]   ;;  %s302_s24 = scalar_lea.hbm %s464_s3, 256 }
  0x25   :  { %s44_s21 = sshll.u32 %s358_s20, 4  ;;  %p303_p2 = scmp.ne.s32.totalorder %s464_s3, %s302_s24  ;;  %s45_s21 = int_to_ptr.vmem [resolvable:$true] %s44_s21 }
  0x26   :  { %p306_p3 = scmp.lt.u32.totalorder %s302_s24, %s464_s3 }
  0x28   :  { %p308_p4 = pnand %p306_p3, %p303_p2 }
  0x2a   :  { %311 = shalt.err (!%p308_p4)
}
  0x2b   :  { %s312_s6 = scalar_lea.vmem %s45_s21, 256  ;;  %p317_p6 = scmp.lt.s32.totalorder %s45_s21, %s45_s21 }
  0x2c   :  { %p313_p5 = scmp.ne.s32.totalorder %s45_s21, %s312_s6  ;;  %p318_p7 = scmp.lt.s32.totalorder %s312_s6, %s312_s6 }
  0x2e   :  { %p319_p8 = por %p318_p7, %p317_p6 }
  0x30   :  { %p320_p9 = pnand %p319_p8, %p313_p5 }
  0x32   :  { %323 = shalt.err (!%p320_p9)
}
  0x33   :  { %50 = dma.hbm_to_vmem [thread:$0]  %s464_s3, 256, %s45_s21, [#allocation6], %s353_s28, %s353_s28, %s354_s29  }
  0x34   :  { %346 = dma.done.wait [#allocation3], 256  }
  0x35   :  { %347 = vsyncadd [#allocation3], 4294967040 }
  0x36   :  { %348 = dma.done.wait [#allocation6], 384  }
  0x37   :  { %349 = vsyncadd [#allocation6], 4294966912  ;;  %v359_v0 = vmov 0.0   ;;  %vm360_vm0 = vmmov 0   ;;  %v255_v1 = vld [vmem:[#allocation5] sm:$0xff]   ;;  %v63_v2 = vld [vmem:[#allocation2] sm:$0xff] }
  0x38   :  { %231 = vmatprep.subr.bf16.mxu0 %v359_v0  ;;  %233 = vmatprep.mubr.msk.bf16.mxu0 %vm360_vm0, %v359_v0  ;;  %v64_v3 = vld [vmem:[#allocation2 + $0x8] sm:$0xff]  ;;  %vm81_vm1 = vcmask 130048   ;;  %v256_v5 = vld [vmem:[#allocation7] sm:$0xff]   ;;  %v257_v6 = vld [vmem:[#allocation7 + $0x8] sm:$0xff]   ;;  %vm152_vm2 = vcmask 261120  }
  0x39   :  { %237 = vmatprep.subr.bf16.mxu1 %v359_v0  ;;  %241 = vmatprep.mubr.msk.bf16.mxu1 %vm360_vm0, %v359_v0  ;;  %v65_v4 = vpack.c.bf16 %v64_v3, %v63_v2  ;;  %v219_v7 = vld [vmem:[%s463_s2] ss:$0 sm:$0xff]  ;;  %s361_s2 = smov [#allocation8]  }
  0x3a   :  { %232 = vmatpush3.bf16.msra.mxu0 %v255_v1  ;;  %238 = vmatpush3.bf16.msra.mxu1 %v256_v5  ;;  %v222_v17 = vld [vmem:[%s465_s4] ss:$0 sm:$0xff]  ;;  %s206_s9 = sshll.u32 %s361_s2, 4  ;;  %s207_s9 = int_to_ptr.vmem [resolvable:$true] %s206_s9 }
  0x3b   :  { %239 = vmatprep.subr.bf16.mxu1 %v359_v0  ;;  %s324_s10 = scalar_lea.vmem %s207_s9, 256  ;;  %p329_p11 = scmp.lt.s32.totalorder %s207_s9, %s207_s9 }
  0x3c   :  { %p325_p10 = scmp.ne.s32.totalorder %s207_s9, %s324_s10  ;;  %p330_p12 = scmp.lt.s32.totalorder %s324_s10, %s324_s10 }
  0x3d   :  { %234 = vmatmul.mubr.msk.bf16.vlgmr.msra.gmra.mrb[0].mxu0 %vm81_vm1, %v65_v4 }
  0x3e   :  { %240 = vmatpush3.bf16.msra.mxu1 %v257_v6  ;;  %p331_p13 = por %p330_p12, %p329_p11 }
  0x40   :  { %p332_p0 = pnand %p331_p13, %p325_p10 }
 0x110   :  { %v119_v8 = vpop.f32.mrb[0].mxu0 }
 0x111   :  { %v120_v9 = vadd.f32 %v219_v7, %v119_v8  ;;  %v235_v10 = vpop.f32.mrb[1].mxu0 }
 0x112   :  { %v122_v11 = vpop.f32.mrb[2].mxu0 }
 0x113   :  { %v123_v12 = vadd.f32 %v219_v7, %v122_v11  ;;  %v236_v13 = vpop.f32.mrb[3].mxu0  ;;  %v126_v14 = vmax.f32 %v120_v9, 0.0 }
 0x115   :  { %v127_v15 = vmax.f32 %v123_v12, 0.0 }
 0x117   :  { %v128_v16 = vpack.c.bf16 %v127_v15, %v126_v14 }
 0x119   :  { %242 = vmatmul.mubr.msk.bf16.vlgmr.msra.gmra.mrb[0].mxu1 %vm152_vm2, %v128_v16 }
 0x1ec   :  { %v190_v18 = vpop.f32.mrb[0].mxu1 }
 0x1ed   :  { %v191_v19 = vadd.f32 %v222_v17, %v190_v18  ;;  %v243_v20 = vpop.f32.mrb[1].mxu1 }
 0x1ee   :  { %v193_v21 = vpop.f32.mrb[2].mxu1 }
 0x1ef   :  { %v197_v22 = vmax.f32 %v191_v19, 0.0  ;;  %v194_v23 = vadd.f32 %v222_v17, %v193_v21  ;;  %v244_v24 = vpop.f32.mrb[3].mxu1 }
 0x1f1   :  { %199 = vst.msk [vmem:[#allocation8] sm:$0xff] %vm152_vm2, %v197_v22  ;;  %v198_v25 = vmax.f32 %v194_v23, 0.0 }
 0x1f3   :  { %200 = vst.msk [vmem:[#allocation8 + $0x8] sm:$0xff] %vm152_vm2, %v198_v25 }
 0x1f4   :  { %335 = shalt.err (!%p332_p0)
}
 0x1f5   :  { %s336_s12 = scalar_lea.hbm %s466_s5, 256 }
 0x1f6   :  { %p337_p1 = scmp.ne.s32.totalorder %s466_s5, %s336_s12  ;;  %p340_p2 = scmp.lt.u32.totalorder %s336_s12, %s466_s5 }
 0x1f8   :  { %p342_p3 = pnand %p340_p2, %p337_p1 }
 0x1fa   :  { %345 = shalt.err (!%p342_p3)
}
 0x1fb   :  { %212 = dma.vmem_to_hbm [thread:$0]  %s207_s9, 256, %s466_s5, [#allocation4], %s356_s1, %s356_s1, %s357_s17  }
 0x1fc   :  { %350 = dma.done.wait [#allocation4], 256  }
 0x1fd   :  { %351 = vsyncadd [#allocation4], 4294967040 }
 0x1fe   :  { %216 = vsyncpa [#allocation3], 1 }
 0x1ff   :  { %217 = vsyncpa [#allocation6], 1 }
 0x200   :  { %218 = vsyncpa [#allocation4], 1 }

</bundles_post_ra>
